<compile_context>
chip_gen: v7x
topology: tpu7x:2x2x1
jax: 0.10.0
libtpu: 0.0.40
codegen_flags: <defaults>
</compile_context>

<pallas_src>
import functools

import jax
import jax.numpy as jnp
from jax import lax
from jax.experimental import pallas as pl
from jax.experimental.pallas import tpu as pltpu


def _round_up(n, m):
    return ((n + m - 1) // m) * m


def agent_model_kernel(x_ref, w1_ref, b1_ref, w2_ref, b2_ref, w3_ref, b3_ref,
                       o_ref, *, out_valid):
    x = x_ref[...]                                            # bf16 [bt, IN]

    # layer1 + ReLU (MXU in bf16, f32 accumulation; elementwise in f32)
    h1 = jnp.dot(x, w1_ref[...], preferred_element_type=jnp.float32)
    h1 = jnp.maximum(h1 + b1_ref[...], 0.0)                   # f32 [bt, H_PAD]

    # layer2 + ReLU
    h2 = jnp.dot(h1.astype(jnp.bfloat16), w2_ref[...],
                 preferred_element_type=jnp.float32)
    h2 = jnp.maximum(h2 + b2_ref[...], 0.0)                   # f32 [bt, H_PAD]

    # layer3 (logits, padded to OUT_PAD lanes)
    logits = jnp.dot(h2.astype(jnp.bfloat16), w3_ref[...],
                     preferred_element_type=jnp.float32)
    logits = logits + b3_ref[...]                             # f32 [bt, OUT_PAD]

    # mask padded output lanes so they do not contaminate the softmax
    lane = lax.broadcasted_iota(jnp.int32, logits.shape, dimension=1)
    logits = jnp.where(lane < out_valid, logits, -jnp.inf)

    # numerically-stable softmax over dim=1
    m = jnp.max(logits, axis=1, keepdims=True)
    e = jnp.exp(logits - m)
    denom = jnp.sum(e, axis=1, keepdims=True)
    o_ref[...] = (e * pl.reciprocal(denom, approx=False)).astype(o_ref.dtype)


def agent_model_forward(x, w1, b1, w2, b2, w3, b3, *, block_b=256):
    """x: [B, IN] f32.  Returns softmax probabilities [B, OUT] f32."""
    B, IN = x.shape
    H = w1.shape[1]
    OUT = w3.shape[1]

    # --- pad feature dims to full 128-lane vregs ---------------------------
    H_PAD = _round_up(H, 128)
    OUT_PAD = _round_up(OUT, 128)

    w1p = jnp.pad(w1, ((0, 0), (0, H_PAD - H))).astype(jnp.bfloat16)
    b1p = jnp.pad(b1, ((0, 0), (0, H_PAD - H))).astype(jnp.float32)
    w2p = jnp.pad(w2, ((0, H_PAD - H), (0, H_PAD - H))).astype(jnp.bfloat16)
    b2p = jnp.pad(b2, ((0, 0), (0, H_PAD - H))).astype(jnp.float32)
    w3p = jnp.pad(w3, ((0, H_PAD - H), (0, OUT_PAD - OUT))).astype(jnp.bfloat16)
    b3p = jnp.pad(b3, ((0, 0), (0, OUT_PAD - OUT))).astype(jnp.float32)

    # --- tile the batch ----------------------------------------------------
    # block_b is a multiple of 8; padded batch rows are zeros (their softmax
    # output is finite and sliced away below).
    bt = min(block_b, _round_up(B, 8))
    B_pad = _round_up(B, bt)
    xp = jnp.pad(x, ((0, B_pad - B), (0, 0))).astype(jnp.bfloat16)
    nb = B_pad // bt

    kernel = functools.partial(agent_model_kernel, out_valid=OUT)

    out_padded = pl.pallas_call(
        kernel,
        out_shape=jax.ShapeDtypeStruct((B_pad, OUT_PAD), jnp.float32),
        grid=(nb,),
        in_specs=[
            pl.BlockSpec((bt, IN), lambda i: (i, 0)),       # x  (tiled on B)
            pl.BlockSpec((IN, H_PAD), lambda i: (0, 0)),    # w1 (resident)
            pl.BlockSpec((1, H_PAD), lambda i: (0, 0)),     # b1
            pl.BlockSpec((H_PAD, H_PAD), lambda i: (0, 0)),  # w2
            pl.BlockSpec((1, H_PAD), lambda i: (0, 0)),     # b2
            pl.BlockSpec((H_PAD, OUT_PAD), lambda i: (0, 0)),  # w3
            pl.BlockSpec((1, OUT_PAD), lambda i: (0, 0)),   # b3
        ],
        out_specs=pl.BlockSpec((bt, OUT_PAD), lambda i: (i, 0)),
        # batch axis is fully parallel -> shard across TensorCores (v7x).
        # VMEM footprint is < 1 MiB, so the default scoped limit is ample.
        compiler_params=pltpu.CompilerParams(
            dimension_semantics=("parallel",)),
    )(xp, w1p, b1p, w2p, b2p, w3p, b3p)

    return out_padded[:B, :OUT]


def init_params(key, input_size=10, hidden_size=64, output_size=2):
    """Deterministic parameter init (shapes follow the nn.Module __init__)."""
    k1, k2, k3, k4, k5, k6 = jax.random.split(key, 6)
    # weights stored as [in, out] (transpose of torch's [out, in])
    w1 = jax.random.normal(k1, (input_size, hidden_size), jnp.float32) * 0.1
    b1 = jax.random.normal(k2, (1, hidden_size), jnp.float32) * 0.1
    w2 = jax.random.normal(k3, (hidden_size, hidden_size), jnp.float32) * 0.1
    b2 = jax.random.normal(k4, (1, hidden_size), jnp.float32) * 0.1
    w3 = jax.random.normal(k5, (hidden_size, output_size), jnp.float32) * 0.1
    b3 = jax.random.normal(k6, (1, output_size), jnp.float32) * 0.1
    return w1, b1, w2, b2, w3, b3


def reference_forward(x, w1, b1, w2, b2, w3, b3):
    h1 = jnp.maximum(x @ w1 + b1, 0.0)
    h2 = jnp.maximum(h1 @ w2 + b2, 0.0)
    logits = h2 @ w3 + b3
    return jax.nn.softmax(logits, axis=1)


if __name__ == "__main__":
    key = jax.random.PRNGKey(0)
    kx, kx2, kp = jax.random.split(key, 3)

    INPUT, HIDDEN, OUTPUT = 10, 64, 2
    params = init_params(kp, INPUT, HIDDEN, OUTPUT)

    # --- small-batch case (matches the module's nominal usage) -------------
    B = 8
    x = jax.random.normal(kx, (B, INPUT), jnp.float32)
    out = jax.block_until_ready(agent_model_forward(x, *params))
    ref = reference_forward(x, *params)
    assert out.shape == (B, OUTPUT)
    # bf16 matmul operands with f32 accumulation -> ~1e-3 level error
    assert jnp.allclose(out, ref, atol=1e-2), "mismatch vs reference (B=8)"
    assert jnp.allclose(jnp.sum(out, axis=1), 1.0, atol=1e-4), \
        "softmax rows must sum to 1"

    # --- larger batch exercising the batch grid + padding path --------------
    B2 = 520  # not a multiple of the 256-row tile -> exercises batch padding
    x2 = jax.random.normal(kx2, (B2, INPUT), jnp.float32)
    out2 = jax.block_until_ready(agent_model_forward(x2, *params))
    ref2 = reference_forward(x2, *params)
    assert out2.shape == (B2, OUTPUT)
    assert jnp.allclose(out2, ref2, atol=1e-2), "mismatch vs reference (B=520)"
    assert jnp.allclose(jnp.sum(out2, axis=1), 1.0, atol=1e-4), \
        "softmax rows must sum to 1 (B=520)"

    print("KERNEL_OK")
</pallas_src>

<mosaic_0001>
module attributes {stable_mosaic.version = 11 : i64} {
  func.func @agent_model_kernel(%arg0: i32, %arg1: memref<8x10xbf16, #tpu.memory_space<vmem>>, %arg2: memref<10x128xbf16, #tpu.memory_space<vmem>>, %arg3: memref<1x128xf32, #tpu.memory_space<vmem>>, %arg4: memref<128x128xbf16, #tpu.memory_space<vmem>>, %arg5: memref<1x128xf32, #tpu.memory_space<vmem>>, %arg6: memref<128x128xbf16, #tpu.memory_space<vmem>>, %arg7: memref<1x128xf32, #tpu.memory_space<vmem>>, %arg8: memref<8x128xf32, #tpu.memory_space<vmem>>) attributes {dimension_semantics = [#tpu.dimension_semantics<parallel>], iteration_bounds = array<i64: 1>, scalar_prefetch = 0 : i64, scratch_operands = 0 : i64, tpu.core_type = #tpu.core_type<tc>, window_params = [{transform_indices = @transform_0, window_bounds = array<i64: 8, 10>}, {pipeline_mode = #tpu.pipeline_mode<synchronous>, transform_indices = @transform_1, window_bounds = array<i64: 10, 128>}, {pipeline_mode = #tpu.pipeline_mode<synchronous>, transform_indices = @transform_2, window_bounds = array<i64: 1, 128>}, {pipeline_mode = #tpu.pipeline_mode<synchronous>, transform_indices = @transform_3, window_bounds = array<i64: 128, 128>}, {pipeline_mode = #tpu.pipeline_mode<synchronous>, transform_indices = @transform_4, window_bounds = array<i64: 1, 128>}, {pipeline_mode = #tpu.pipeline_mode<synchronous>, transform_indices = @transform_5, window_bounds = array<i64: 128, 128>}, {pipeline_mode = #tpu.pipeline_mode<synchronous>, transform_indices = @transform_6, window_bounds = array<i64: 1, 128>}, {transform_indices = @transform_7, window_bounds = array<i64: 8, 128>}]} {
    %c0 = arith.constant 0 : index
    %c0_0 = arith.constant 0 : index
    %0 = vector.load %arg1[%c0, %c0_0] : memref<8x10xbf16, #tpu.memory_space<vmem>>, vector<8x10xbf16>
    %c0_1 = arith.constant 0 : index
    %c0_2 = arith.constant 0 : index
    %1 = vector.load %arg2[%c0_1, %c0_2] : memref<10x128xbf16, #tpu.memory_space<vmem>>, vector<10x128xbf16>
    %cst = arith.constant dense<0.000000e+00> : vector<8x128xf32>
    %2 = tpu.matmul %0, %1, %cst {dimension_numbers = #tpu.dot_dimension_numbers<[1], [0], [0], [1], [0, 0, 1, 1], [], []>} : vector<8x10xbf16>, vector<10x128xbf16>, vector<8x128xf32> -> vector<8x128xf32>
    %c0_3 = arith.constant 0 : index
    %c0_4 = arith.constant 0 : index
    %3 = vector.load %arg3[%c0_3, %c0_4] : memref<1x128xf32, #tpu.memory_space<vmem>>, vector<1x128xf32>
    %4 = vector.broadcast %3 : vector<1x128xf32> to vector<8x128xf32>
    %5 = arith.addf %2, %4 : vector<8x128xf32>
    %cst_5 = arith.constant 0.000000e+00 : f32
    %6 = vector.broadcast %cst_5 : f32 to vector<8x128xf32>
    %7 = arith.maximumf %5, %6 : vector<8x128xf32>
    %8 = arith.truncf %7 : vector<8x128xf32> to vector<8x128xbf16>
    %c0_6 = arith.constant 0 : index
    %c0_7 = arith.constant 0 : index
    %9 = vector.load %arg4[%c0_6, %c0_7] : memref<128x128xbf16, #tpu.memory_space<vmem>>, vector<128x128xbf16>
    %cst_8 = arith.constant dense<0.000000e+00> : vector<8x128xf32>
    %10 = tpu.matmul %8, %9, %cst_8 {dimension_numbers = #tpu.dot_dimension_numbers<[1], [0], [0], [1], [0, 0, 1, 1], [], []>} : vector<8x128xbf16>, vector<128x128xbf16>, vector<8x128xf32> -> vector<8x128xf32>
    %c0_9 = arith.constant 0 : index
    %c0_10 = arith.constant 0 : index
    %11 = vector.load %arg5[%c0_9, %c0_10] : memref<1x128xf32, #tpu.memory_space<vmem>>, vector<1x128xf32>
    %12 = vector.broadcast %11 : vector<1x128xf32> to vector<8x128xf32>
    %13 = arith.addf %10, %12 : vector<8x128xf32>
    %cst_11 = arith.constant 0.000000e+00 : f32
    %14 = vector.broadcast %cst_11 : f32 to vector<8x128xf32>
    %15 = arith.maximumf %13, %14 : vector<8x128xf32>
    %16 = arith.truncf %15 : vector<8x128xf32> to vector<8x128xbf16>
    %c0_12 = arith.constant 0 : index
    %c0_13 = arith.constant 0 : index
    %17 = vector.load %arg6[%c0_12, %c0_13] : memref<128x128xbf16, #tpu.memory_space<vmem>>, vector<128x128xbf16>
    %cst_14 = arith.constant dense<0.000000e+00> : vector<8x128xf32>
    %18 = tpu.matmul %16, %17, %cst_14 {dimension_numbers = #tpu.dot_dimension_numbers<[1], [0], [0], [1], [0, 0, 1, 1], [], []>} : vector<8x128xbf16>, vector<128x128xbf16>, vector<8x128xf32> -> vector<8x128xf32>
    %c0_15 = arith.constant 0 : index
    %c0_16 = arith.constant 0 : index
    %19 = vector.load %arg7[%c0_15, %c0_16] : memref<1x128xf32, #tpu.memory_space<vmem>>, vector<1x128xf32>
    %20 = vector.broadcast %19 : vector<1x128xf32> to vector<8x128xf32>
    %21 = arith.addf %18, %20 : vector<8x128xf32>
    %22 = tpu.iota {dimensions = array<i32: 1>} : vector<8x128xi32>
    %c2_i32 = arith.constant 2 : i32
    %23 = vector.broadcast %c2_i32 : i32 to vector<8x128xi32>
    %24 = arith.cmpi slt, %22, %23 : vector<8x128xi32>
    %cst_17 = arith.constant 0xFF800000 : f32
    %25 = vector.broadcast %cst_17 : f32 to vector<8x128xf32>
    %26 = arith.select %24, %21, %25 : vector<8x128xi1>, vector<8x128xf32>
    %cst_18 = arith.constant dense<0xFF800000> : vector<8xf32>
    %27 = vector.multi_reduction <maximumf>, %26, %cst_18 [1] : vector<8x128xf32> to vector<8xf32>
    %28 = vector.shape_cast %27 : vector<8xf32> to vector<8x1xf32>
    %29 = vector.broadcast %28 : vector<8x1xf32> to vector<8x128xf32>
    %30 = arith.subf %26, %29 : vector<8x128xf32>
    %31 = math.exp %30 : vector<8x128xf32>
    %cst_19 = arith.constant dense<0.000000e+00> : vector<8xf32>
    %32 = vector.multi_reduction <add>, %31, %cst_19 [1] : vector<8x128xf32> to vector<8xf32>
    %33 = vector.shape_cast %32 : vector<8xf32> to vector<8x1xf32>
    %34 = tpu.reciprocal %33 : vector<8x1xf32> -> vector<8x1xf32>
    %35 = vector.broadcast %34 : vector<8x1xf32> to vector<8x128xf32>
    %36 = arith.mulf %31, %35 : vector<8x128xf32>
    %c0_20 = arith.constant 0 : index
    %c0_21 = arith.constant 0 : index
    %37 = vector.load %arg8[%c0_20, %c0_21] : memref<8x128xf32, #tpu.memory_space<vmem>>, vector<8x128xf32>
    tpu.vector_store %arg8[%c0_20, %c0_21], %36 {strides = array<i32>} : memref<8x128xf32, #tpu.memory_space<vmem>>, vector<8x128xf32>,
    return
  }
  func.func @transform_0(%arg0: i32) -> (i32, i32) {
    %c0_i32 = arith.constant 0 : i32
    %c0_i32_0 = arith.constant 0 : i32
    return %arg0, %c0_i32 : i32, i32
  }
  func.func @transform_1(%arg0: i32) -> (i32, i32) {
    %c0_i32 = arith.constant 0 : i32
    %c0_i32_0 = arith.constant 0 : i32
    %c0_i32_1 = arith.constant 0 : i32
    return %c0_i32, %c0_i32_0 : i32, i32
  }
  func.func @transform_2(%arg0: i32) -> (i32, i32) {
    %c0_i32 = arith.constant 0 : i32
    %c0_i32_0 = arith.constant 0 : i32
    %c0_i32_1 = arith.constant 0 : i32
    return %c0_i32, %c0_i32_0 : i32, i32
  }
  func.func @transform_3(%arg0: i32) -> (i32, i32) {
    %c0_i32 = arith.constant 0 : i32
    %c0_i32_0 = arith.constant 0 : i32
    %c0_i32_1 = arith.constant 0 : i32
    return %c0_i32, %c0_i32_0 : i32, i32
  }
  func.func @transform_4(%arg0: i32) -> (i32, i32) {
    %c0_i32 = arith.constant 0 : i32
    %c0_i32_0 = arith.constant 0 : i32
    %c0_i32_1 = arith.constant 0 : i32
    return %c0_i32, %c0_i32_0 : i32, i32
  }
  func.func @transform_5(%arg0: i32) -> (i32, i32) {
    %c0_i32 = arith.constant 0 : i32
    %c0_i32_0 = arith.constant 0 : i32
    %c0_i32_1 = arith.constant 0 : i32
    return %c0_i32, %c0_i32_0 : i32, i32
  }
  func.func @transform_6(%arg0: i32) -> (i32, i32) {
    %c0_i32 = arith.constant 0 : i32
    %c0_i32_0 = arith.constant 0 : i32
    %c0_i32_1 = arith.constant 0 : i32
    return %c0_i32, %c0_i32_0 : i32, i32
  }
  func.func @transform_7(%arg0: i32) -> (i32, i32) {
    %c0_i32 = arith.constant 0 : i32
    %c0_i32_0 = arith.constant 0 : i32
    return %arg0, %c0_i32 : i32, i32
  }
}

</mosaic_0001>

<bundles_post_ra>
// kernel: tpu_custom_call.1
= control target key start
LH: loop header
LB: loop body
LE: loop exit
PB: predicated region body
PF: predicated region fallthrough
CT: control target
= control target key end

     0   :  { %12 = vsyncpa [#allocation3], 0  ;;  %s786_s0 = inlined_call_operand.hbm [shape: bf16[8,10], index: 0, kind: input, shape index: {}]   ;;  %s787_s1 = inlined_call_operand.hbm [shape: bf16[10,128], index: 1, kind: input, shape index: {}]   ;;  %s788_s2 = inlined_call_operand.vmem [shape: f32[1,128], index: 2, kind: input, shape index: {}]   ;;  %s789_s3 = inlined_call_operand.hbm [shape: bf16[128,128], index: 3, kind: input, shape index: {}]   ;;  %s790_s4 = inlined_call_operand.vmem [shape: f32[1,128], index: 4, kind: input, shape index: {}]   ;;  %s791_s5 = inlined_call_operand.hbm [shape: bf16[128,128], index: 5, kind: input, shape index: {}]   ;;  %s792_s6 = inlined_call_operand.vmem [shape: f32[1,128], index: 6, kind: input, shape index: {}]   ;;  %s793_s7 = inlined_call_operand.hbm [shape: f32[8,128], index: 7, kind: output, shape index: {}]  }
   0x1   :  { %13 = vsyncpa [#allocation6], 0 }
   0x2   :  { %14 = vsyncpa [#allocation9], 0 }
   0x3   :  { %15 = vsyncpa [#allocation4], 0  ;;  %s636_s24 = smov [#allocation5]   ;;  %s518_s28 = scalar_lea.hbm %s787_s1, 128 }
   0x4   :  { %s31_s25 = sshll.u32 %s636_s24, 4  ;;  %p519_p0 = scmp.ne.s32.totalorder %s787_s1, %s518_s28  ;;  %s32_s25 = int_to_ptr.vmem [resolvable:$true] %s31_s25 }
   0x5   :  { %p522_p1 = scmp.lt.u32.totalorder %s518_s28, %s787_s1 }
   0x7   :  { %p524_p2 = pnand %p522_p1, %p519_p0 }
   0x9   :  { %527 = shalt.err (!%p524_p2)
}
   0xa   :  { %s528_s10 = scalar_lea.vmem %s32_s25, 128  ;;  %p533_p4 = scmp.lt.s32.totalorder %s32_s25, %s32_s25 }
   0xb   :  { %p529_p3 = scmp.ne.s32.totalorder %s32_s25, %s528_s10  ;;  %p534_p5 = scmp.lt.s32.totalorder %s528_s10, %s528_s10 }
   0xd   :  { %p535_p6 = por %p534_p5, %p533_p4 }
   0xf   :  { %p536_p7 = pnand %p535_p6, %p529_p3 }
  0x11   :  { %539 = shalt.err (!%p536_p7)
}
  0x12   :  { %s637_s11 = smov 64   ;;  %s638_s12 = smov 4  }
  0x13   :  { %37 = dma.hbm_to_vmem [thread:$0]  %s787_s1, 128, %s32_s25, [#allocation6], %s637_s11, %s637_s11, %s638_s12  }
  0x14   :  { %s639_s15 = smov [#allocation2]   ;;  %s640_s17 = smov [#allocation7]  }
  0x15   :  { %s22_s16 = sshll.u32 %s639_s15, 4  ;;  %s45_s18 = sshll.u32 %s640_s17, 4  ;;  %s23_s16 = int_to_ptr.vmem [resolvable:$true] %s22_s16  ;;  %s46_s18 = int_to_ptr.vmem [resolvable:$true] %s45_s18 }
  0x16   :  { %s540_s21 = scalar_lea.hbm %s786_s0, 64 }
  0x17   :  { %p541_p8 = scmp.ne.s32.totalorder %s786_s0, %s540_s21  ;;  %p544_p9 = scmp.lt.u32.totalorder %s540_s21, %s786_s0 }
  0x19   :  { %p546_p10 = pnand %p544_p9, %p541_p8 }
  0x1b   :  { %549 = shalt.err (!%p546_p10)
}
  0x1c   :  { %s550_s1 = scalar_lea.vmem %s23_s16, 64  ;;  %p555_p12 = scmp.lt.s32.totalorder %s23_s16, %s23_s16 }
  0x1d   :  { %p551_p11 = scmp.ne.s32.totalorder %s23_s16, %s550_s1  ;;  %p556_p13 = scmp.lt.s32.totalorder %s550_s1, %s550_s1 }
  0x1f   :  { %p557_p0 = por %p556_p13, %p555_p12 }
  0x21   :  { %p558_p1 = pnand %p557_p0, %p551_p11 }
  0x23   :  { %561 = shalt.err (!%p558_p1)
}
  0x24   :  { %25 = dma.hbm_to_vmem [thread:$0]  %s786_s0, 64, %s23_s16, [#allocation3]  }
  0x25   :  { %s562_s30 = scalar_lea.hbm %s789_s3, 1024 }
  0x26   :  { %p563_p2 = scmp.ne.s32.totalorder %s789_s3, %s562_s30  ;;  %p566_p3 = scmp.lt.u32.totalorder %s562_s30, %s789_s3 }
  0x28   :  { %p568_p4 = pnand %p566_p3, %p563_p2 }
  0x2a   :  { %571 = shalt.err (!%p568_p4)
}
  0x2b   :  { %s572_s14 = scalar_lea.vmem %s46_s18, 1024  ;;  %p577_p6 = scmp.lt.s32.totalorder %s46_s18, %s46_s18 }
  0x2c   :  { %p573_p5 = scmp.ne.s32.totalorder %s46_s18, %s572_s14  ;;  %p578_p7 = scmp.lt.s32.totalorder %s572_s14, %s572_s14 }
  0x2e   :  { %p579_p8 = por %p578_p7, %p577_p6 }
  0x30   :  { %p580_p9 = pnand %p579_p8, %p573_p5 }
  0x32   :  { %583 = shalt.err (!%p580_p9)
}
  0x33   :  { %51 = dma.hbm_to_vmem [thread:$0]  %s789_s3, 1024, %s46_s18, [#allocation6], %s637_s11, %s637_s11, %s638_s12  }
  0x34   :  { %s641_s16 = smov [#allocation8]   ;;  %s584_s21 = scalar_lea.hbm %s791_s5, 1024 }
  0x35   :  { %s59_s17 = sshll.u32 %s641_s16, 4  ;;  %p585_p10 = scmp.ne.s32.totalorder %s791_s5, %s584_s21  ;;  %s60_s17 = int_to_ptr.vmem [resolvable:$true] %s59_s17 }
  0x36   :  { %p588_p11 = scmp.lt.u32.totalorder %s584_s21, %s791_s5 }
  0x38   :  { %p590_p12 = pnand %p588_p11, %p585_p10 }
  0x3a   :  { %593 = shalt.err (!%p590_p12)
}
  0x3b   :  { %s594_s1 = scalar_lea.vmem %s60_s17, 1024  ;;  %p599_p0 = scmp.lt.s32.totalorder %s60_s17, %s60_s17 }
  0x3c   :  { %p595_p13 = scmp.ne.s32.totalorder %s60_s17, %s594_s1  ;;  %p600_p1 = scmp.lt.s32.totalorder %s594_s1, %s594_s1 }
  0x3e   :  { %p601_p2 = por %p600_p1, %p599_p0 }
  0x40   :  { %p602_p3 = pnand %p601_p2, %p595_p13 }
  0x42   :  { %605 = shalt.err (!%p602_p3)
}
  0x43   :  { %65 = dma.hbm_to_vmem [thread:$0]  %s791_s5, 1024, %s60_s17, [#allocation9], %s637_s11, %s637_s11, %s638_s12  }
  0x44   :  { %628 = dma.done.wait [#allocation3], 64  }
  0x45   :  { %629 = vsyncadd [#allocation3], 4294967232 }
  0x46   :  { %630 = dma.done.wait [#allocation6], 1152  }
  0x47   :  { %631 = vsyncadd [#allocation6], 4294966144 }
  0x48   :  { %632 = dma.done.wait [#allocation9], 1024  }
  0x49   :  { %633 = vsyncadd [#allocation9], 4294966272  ;;  %v642_v0 = vmov 0.0   ;;  %vm643_vm0 = vmmov 0   ;;  %vm100_vm1 = vcmask 1044480   ;;  %vm96_vm2 = vcmask 80896  }
  0x4a   :  { %442 = vmatprep.subr.bf16.mxu0 %v642_v0  ;;  %444 = vmatprep.mubr.msk.bf16.mxu0 %vm643_vm0, %v642_v0  ;;  %v497_v1 = vld [vmem:[#allocation5] sm:$0x1f]   ;;  %v498_v3 = vld [vmem:[#allocation7] sm:$0xff]   ;;  %v81_v4 = vld [vmem:[#allocation2] sm:$0xf]  ;;  %v370_v36 = vlaneseq }
  0x4b   :  { %448 = vmatprep.subr.bf16.mxu1 %v642_v0  ;;  %464 = vmatprep.mubr.msk.bf16.mxu1 %vm643_vm0, %v642_v0  ;;  %v102_v2 = vsel %vm100_vm1, %v497_v1, 0  ;;  %v499_v5 = vld [vmem:[#allocation7 + $0x8] sm:$0xff]   ;;  %v500_v6 = vld [vmem:[#allocation7 + $0x10] sm:$0xff]   ;;  %v501_v7 = vld [vmem:[#allocation7 + $0x18] sm:$0xff]  }
  0x4c   :  { %443 = vmatpush3.bf16.msra.mxu0 %v102_v2  ;;  %449 = vmatpush3.bf16.msra.mxu1 %v498_v3  ;;  %v502_v8 = vld [vmem:[#allocation7 + $0x20] sm:$0xff]   ;;  %v503_v9 = vld [vmem:[#allocation7 + $0x28] sm:$0xff]   ;;  %v504_v10 = vld [vmem:[#allocation7 + $0x30] sm:$0xff]   ;;  %v371_v37 = vand.u32 127, %v370_v36 }
  0x4d   :  { %468 = vmatprep.subr.bf16.mxu0 %v642_v0  ;;  %450 = vmatprep.subr.bf16.mxu1 %v642_v0  ;;  %v505_v11 = vld [vmem:[#allocation7 + $0x38] sm:$0xff]   ;;  %v506_v12 = vld [vmem:[#allocation8] sm:$0xff]   ;;  %v507_v13 = vld [vmem:[#allocation8 + $0x8] sm:$0xff]  }
  0x4e   :  { %v508_v14 = vld [vmem:[#allocation8 + $0x10] sm:$0xff]   ;;  %v509_v15 = vld [vmem:[#allocation8 + $0x18] sm:$0xff]   ;;  %v510_v16 = vld [vmem:[#allocation8 + $0x20] sm:$0xff]   ;;  %vm372_vm3 = vcmp.lt.s32.totalorder %v371_v37, 2 }
  0x4f   :  { %445 = vmatmul.mubr.msk.bf16.vlgmr.msra.gmra.mrb[0].mxu0 %vm96_vm2, %v81_v4  ;;  %v511_v17 = vld [vmem:[#allocation8 + $0x28] sm:$0xff]   ;;  %v401_v18 = vld [vmem:[%s788_s2] ss:$0 sm:$0xff]  ;;  %v513_v27 = vld [vmem:[#allocation8 + $0x38] sm:$0xff]  }
  0x50   :  { %484 = vmatprep.mubr.msk.bf16.mxu0 %vm643_vm0, %v642_v0  ;;  %451 = vmatpush3.bf16.msra.mxu1 %v499_v5  ;;  %v512_v26 = vld [vmem:[#allocation8 + $0x30] sm:$0xff]  }
  0x51   :  { %452 = vmatprep.subr.bf16.mxu1 %v642_v0  ;;  %469 = vmatpush3.bf16.msra.mxu0 %v506_v12  ;;  %v404_v28 = vld [vmem:[%s790_s4] ss:$0 sm:$0xff]  ;;  %s644_s4 = smov [#allocation10]  }
  0x52   :  { %470 = vmatprep.subr.bf16.mxu0 %v642_v0  ;;  %v413_v38 = vld [vmem:[%s792_s6] ss:$0 sm:$0xff]  ;;  %s390_s28 = sshll.u32 %s644_s4, 4  ;;  %s391_s28 = int_to_ptr.vmem [resolvable:$true] %s390_s28 }
  0x53   :  { %s606_s6 = scalar_lea.vmem %s391_s28, 128  ;;  %p611_p5 = scmp.lt.s32.totalorder %s391_s28, %s391_s28 }
  0x54   :  { %453 = vmatpush3.bf16.msra.mxu1 %v500_v6  ;;  %p607_p4 = scmp.ne.s32.totalorder %s391_s28, %s606_s6  ;;  %p612_p6 = scmp.lt.s32.totalorder %s606_s6, %s606_s6 }
  0x55   :  { %454 = vmatprep.subr.bf16.mxu1 %v642_v0  ;;  %471 = vmatpush3.bf16.msra.mxu0 %v507_v13 }
  0x56   :  { %472 = vmatprep.subr.bf16.mxu0 %v642_v0  ;;  %p613_p7 = por %p612_p6, %p611_p5 }
  0x58   :  { %455 = vmatpush3.bf16.msra.mxu1 %v501_v7  ;;  %p614_p8 = pnand %p613_p7, %p607_p4 }
  0x59   :  { %456 = vmatprep.subr.bf16.mxu1 %v642_v0  ;;  %473 = vmatpush3.bf16.msra.mxu0 %v508_v14 }
  0x5a   :  { %474 = vmatprep.subr.bf16.mxu0 %v642_v0 }
  0x5c   :  { %457 = vmatpush3.bf16.msra.mxu1 %v502_v8 }
  0x5d   :  { %458 = vmatprep.subr.bf16.mxu1 %v642_v0  ;;  %475 = vmatpush3.bf16.msra.mxu0 %v509_v15 }
  0x5e   :  { %476 = vmatprep.subr.bf16.mxu0 %v642_v0 }
  0x60   :  { %459 = vmatpush3.bf16.msra.mxu1 %v503_v9 }
  0x61   :  { %460 = vmatprep.subr.bf16.mxu1 %v642_v0  ;;  %477 = vmatpush3.bf16.msra.mxu0 %v510_v16 }
  0x62   :  { %478 = vmatprep.subr.bf16.mxu0 %v642_v0 }
  0x64   :  { %461 = vmatpush3.bf16.msra.mxu1 %v504_v10 }
  0x65   :  { %462 = vmatprep.subr.bf16.mxu1 %v642_v0  ;;  %479 = vmatpush3.bf16.msra.mxu0 %v511_v17 }
  0x66   :  { %480 = vmatprep.subr.bf16.mxu0 %v642_v0 }
  0x68   :  { %463 = vmatpush3.bf16.msra.mxu1 %v505_v11 }
  0x69   :  { %481 = vmatpush3.bf16.msra.mxu0 %v512_v26 }
  0x6a   :  { %482 = vmatprep.subr.bf16.mxu0 %v642_v0 }
  0x6d   :  { %483 = vmatpush3.bf16.msra.mxu0 %v513_v27 }
 0x122   :  { %v138_v19 = vpop.f32.mrb[0].mxu0 }
 0x123   :  { %v139_v20 = vadd.f32 %v401_v18, %v138_v19  ;;  %v446_v21 = vpop.f32.mrb[1].mxu0 }
 0x124   :  { %v141_v22 = vpop.f32.mrb[2].mxu0 }
 0x125   :  { %v144_v23 = vmax.f32 %v139_v20, 0.0  ;;  %v447_v24 = vpop.f32.mrb[3].mxu0 }
 0x127   :  { %v145_v25 = vpack.c.bf16 %v144_v23, %v144_v23 }
 0x129   :  { %465 = vmatmul.mubr.bf16.vlgmr.msra.gmra.mrb[0].mxu1 %v145_v25 }
 0x1fc   :  { %v251_v29 = vpop.f32.mrb[0].mxu1 }
 0x1fd   :  { %v252_v30 = vadd.f32 %v404_v28, %v251_v29  ;;  %v466_v31 = vpop.f32.mrb[1].mxu1 }
 0x1fe   :  { %v254_v32 = vpop.f32.mrb[2].mxu1 }
 0x1ff   :  { %v257_v33 = vmax.f32 %v252_v30, 0.0  ;;  %v467_v34 = vpop.f32.mrb[3].mxu1 }
 0x201   :  { %v258_v35 = vpack.c.bf16 %v257_v33, %v257_v33 }
 0x203   :  { %485 = vmatmul.mubr.bf16.vlgmr.msra.gmra.mrb[4].mxu0 %v258_v35 }
 0x2d6   :  { %v364_v39 = vpop.f32.mrb[4].mxu0 }
 0x2d7   :  { %v365_v40 = vadd.f32 %v413_v38, %v364_v39  ;;  %v486_v41 = vpop.f32.mrb[5].mxu0 }
 0x2d8   :  { %v367_v42 = vpop.f32.mrb[6].mxu0 }
 0x2d9   :  { %v487_v43 = vpop.f32.mrb[7].mxu0  ;;  %v373_v44 = vsel %vm372_vm3, %v365_v40, -inf }
 0x2da   :  { %374 = vmax.xlane.f32.xlu0 %v373_v44 }
 0x367   :  { %v375_v45 = vpop.xlane.xlu0 %374 }
 0x368   :  { %v376_v46 = vsub.f32 %v373_v44, %v375_v45 }
 0x36a   :  { %v377_v47 = vmul.f32 1.442695, %v376_v46 }
 0x36c   :  { %514 = vpow2.f32 %v377_v47 }
 0x376   :  { %v515_v48 = vpop.eup %514 }
 0x377   :  { %379 = vadd.xlane.f32.xlu0 %v515_v48 }
 0x404   :  { %v380_v49 = vpop.xlane.xlu0 %379 }
 0x405   :  { %516 = vrcp.f32 %v380_v49 }
 0x40f   :  { %v517_v50 = vpop.eup %516 }
 0x410   :  { %v382_v51 = vmul.f32 %v517_v50, %v515_v48 }
 0x412   :  { %383 = vst [vmem:[#allocation10] sm:$0xff] %v382_v51 }
 0x413   :  { %617 = shalt.err (!%p614_p8)
}
 0x414   :  { %s618_s8 = scalar_lea.hbm %s793_s7, 128 }
 0x415   :  { %p619_p9 = scmp.ne.s32.totalorder %s793_s7, %s618_s8  ;;  %p622_p10 = scmp.lt.u32.totalorder %s618_s8, %s793_s7 }
 0x417   :  { %p624_p11 = pnand %p622_p10, %p619_p9 }
 0x419   :  { %627 = shalt.err (!%p624_p11)
}
 0x41a   :  { %393 = dma.vmem_to_hbm [thread:$0]  %s391_s28, 128, %s793_s7, [#allocation4]  }
 0x41b   :  { %634 = dma.done.wait [#allocation4], 128  }
 0x41c   :  { %635 = vsyncadd [#allocation4], 4294967168 }
 0x41d   :  { %397 = vsyncpa [#allocation3], 1 }
 0x41e   :  { %398 = vsyncpa [#allocation6], 1 }
 0x41f   :  { %399 = vsyncpa [#allocation9], 1 }
 0x420   :  { %400 = vsyncpa [#allocation4], 1 }

</bundles_post_ra>
